<compile_context>
chip_gen: v7x
topology: tpu7x:2x2x1
jax: 0.10.0
libtpu: 0.0.40
codegen_flags: <defaults>
</compile_context>

<pallas_src>
import math

import jax
import jax.numpy as jnp
from jax.experimental import pallas as pl
from jax.experimental.pallas import tpu as pltpu

_DEFAULT_CHUNK_BYTES = 4 * 1024 * 1024   # per-DMA chunk for the copy path
_MAX_INFLIGHT = 4                        # review: keep 2-4 HBM->HBM DMAs in flight


def _resolve_shape(shape, total):
    """Resolve an optional single -1 and validate the element count."""
    shape = tuple(int(s) for s in shape)
    if shape.count(-1) > 1:
        raise ValueError("at most one -1 allowed in target shape")
    if -1 in shape:
        known = math.prod(s for s in shape if s != -1)
        if known == 0 or total % known != 0:
            raise ValueError(f"cannot infer -1 for {total} elements in {shape}")
        shape = tuple(total // known if s == -1 else s for s in shape)
    if math.prod(shape) != total:
        raise ValueError(f"cannot reshape {total} elements into {shape}")
    return shape


# --------------------------------------------------------------------------
# Default (no-copy) path: output aliases input, kernel does nothing.
# --------------------------------------------------------------------------
def _aliased_view_kernel(x_ref, o_ref, flag_ref):
    # Output aliases input (input_output_aliases={0: 0}); a contiguous
    # row-major reshape needs no data movement, so there is nothing to do.
    # The SMEM store just keeps the lowered kernel body non-empty; it costs
    # nothing.
    del x_ref, o_ref
    flag_ref[0] = jnp.int32(1)


def _reshape_view(x, out_shape):
    x_view = jnp.reshape(x, out_shape)   # metadata-only view on the wrapper side
    return pl.pallas_call(
        _aliased_view_kernel,
        out_shape=jax.ShapeDtypeStruct(out_shape, x.dtype),
        in_specs=[pl.BlockSpec(memory_space=pl.ANY)],
        out_specs=pl.BlockSpec(memory_space=pl.ANY),
        scratch_shapes=[pltpu.SMEM((1,), jnp.int32)],
        input_output_aliases={0: 0},
    )(x_view)


# --------------------------------------------------------------------------
# Explicit-copy path: chunked HBM->HBM DMA, no VMEM staging.
# --------------------------------------------------------------------------
def _make_hbm_copy_kernel(total, chunk, inflight):
    """Flat HBM->HBM copy with up to `inflight` async copies in flight."""
    n_full = total // chunk
    tail = total - n_full * chunk
    k = max(1, min(inflight, n_full))

    def kernel(x_ref, o_ref, sem):
        def dma(c, slot):
            off = c * chunk
            return pltpu.make_async_copy(
                x_ref.at[pl.ds(off, chunk)],
                o_ref.at[pl.ds(off, chunk)],
                sem.at[slot],
            )

        if n_full > 0:
            # Prime the window (static, at most `inflight` iterations).
            for c in range(k):
                dma(c, c).start()

            @pl.loop(0, n_full)
            def _(c):
                slot = c % k
                dma(c, slot).wait()

                @pl.when(c + k < n_full)
                def _():
                    dma(c + k, slot).start()

        if tail > 0:
            off = n_full * chunk
            cp = pltpu.make_async_copy(
                x_ref.at[pl.ds(off, tail)],
                o_ref.at[pl.ds(off, tail)],
                sem.at[0],
            )
            cp.start()
            cp.wait()

    return kernel, k


def _reshape_copy(x, out_shape, total, chunk_bytes):
    itemsize = jnp.dtype(x.dtype).itemsize
    chunk = max(1, min(total, max(1, chunk_bytes // itemsize)))
    if chunk >= 1024:
        chunk -= chunk % 1024            # keep DMA chunk starts nicely aligned

    kernel, k = _make_hbm_copy_kernel(total, chunk, _MAX_INFLIGHT)
    x_flat = jnp.reshape(x, (total,))    # metadata-only

    y_flat = pl.pallas_call(
        kernel,
        out_shape=jax.ShapeDtypeStruct((total,), x.dtype),
        in_specs=[pl.BlockSpec(memory_space=pl.ANY)],
        out_specs=pl.BlockSpec(memory_space=pl.ANY),
        scratch_shapes=[pltpu.SemaphoreType.DMA((k,))],
    )(x_flat)
    return jnp.reshape(y_flat, out_shape)


# --------------------------------------------------------------------------
# Wrapper / module
# --------------------------------------------------------------------------
def pallas_reshape(x, shape, *, copy=False, chunk_bytes=_DEFAULT_CHUNK_BYTES):
    """Equivalent of torch.Tensor.reshape(shape) for a contiguous tensor."""
    total = math.prod(x.shape)
    out_shape = _resolve_shape(shape, total)

    if total == 0:
        # Zero-sized arrays: nothing to alias or move.
        return jnp.reshape(x, out_shape)

    if not copy:
        return _reshape_view(x, out_shape)
    return _reshape_copy(x, out_shape, total, chunk_bytes)


class Reshape:
    """Mirror of the PyTorch module: stores a fixed target shape."""

    def __init__(self, shape):
        self.shape = tuple(shape)

    def __call__(self, x):
        return pallas_reshape(x, self.shape)


if __name__ == "__main__":
    key = jax.random.PRNGKey(0)

    # Primary check: module forward (default aliased, zero-copy path).
    x = jax.random.normal(key, (2, 4, 16, 16), dtype=jnp.float32)
    target = (2, 16, 4, 16)          # same element count (2048)
    module = Reshape(target)
    out = jax.block_until_ready(module(x))
    ref = jnp.reshape(x, target)
    assert out.shape == target
    assert out.dtype == x.dtype
    assert jnp.array_equal(out, ref), "aliased path mismatch vs reshape reference"

    # Explicit-copy path: small chunk size forces 8 chunks with a 4-deep
    # in-flight DMA window (exercises the steady-state pipeline).
    out_copy = jax.block_until_ready(
        pallas_reshape(x, target, copy=True, chunk_bytes=1024))
    assert jnp.array_equal(out_copy, ref), "HBM->HBM copy path mismatch"

    # Copy path with an element count not divisible by 128 and a ragged tail
    # chunk (3 full chunks + tail).
    x2 = jax.random.normal(jax.random.PRNGKey(1), (2, 3, 5, 7), dtype=jnp.float32)
    out2 = jax.block_until_ready(
        pallas_reshape(x2, (5, 7, 3, 2), copy=True, chunk_bytes=256))
    assert jnp.array_equal(out2, jnp.reshape(x2, (5, 7, 3, 2))), "tail-chunk mismatch"

    print("KERNEL_OK")
</pallas_src>

<mosaic_0001>
module attributes {stable_mosaic.version = 11 : i64} {
  func.func @_aliased_view_kernel(%arg0: memref<2x16x4x16xf32, #tpu.memory_space<any>>, %arg1: memref<2x16x4x16xf32, #tpu.memory_space<any>>, %arg2: memref<1xi32, #tpu.memory_space<smem>>) attributes {dimension_semantics = [], scalar_prefetch = 0 : i64, scratch_operands = 1 : i64, tpu.core_type = #tpu.core_type<tc>} {
    %c1_i32 = arith.constant 1 : i32
    %c0 = arith.constant 0 : index
    %0 = memref.load %arg2[%c0] : memref<1xi32, #tpu.memory_space<smem>>
    memref.store %c1_i32, %arg2[%c0] : memref<1xi32, #tpu.memory_space<smem>>
    return
  }
}

</mosaic_0001>

<bundles_post_ra>
// kernel: tpu_custom_call.1
= control target key start
LH: loop header
LB: loop body
LE: loop exit
PB: predicated region body
PF: predicated region fallthrough
CT: control target
= control target key end

     0   :  { %s18_s0 = inlined_call_operand.hbm [shape: f32[2,16,4,16], index: 0, kind: input, shape index: {}, may-alias: {0,1}]   ;;  %s19_s1 = inlined_call_operand.hbm [shape: f32[2,16,4,16], index: 1, kind: output, shape index: {}, may-alias: {0,1}]  }

</bundles_post_ra>
